<compile_context>
chip_gen: v5e
topology: v5e:2x2
jax: 0.10.0
libtpu: 0.0.40
codegen_flags: <defaults>
</compile_context>

<pallas_src>
import jax
import jax.numpy as jnp
from jax import lax
from jax.experimental import pallas as pl
from jax.experimental.pallas import tpu as pltpu


def _round_up(n, m):
    return (n + m - 1) // m * m


def _qnet_kernel(x_ref, w1_ref, b1_ref, w2_ref, b2_ref, o_ref):
    # linear1: contract x (TB, In) with PyTorch-layout w1 (H, In) on the In
    # axis -> (TB, H).  dot_general handles the (out, in) layout on the MXU,
    # so no wrapper-side transpose is needed.
    h = lax.dot_general(
        x_ref[...], w1_ref[...],
        dimension_numbers=(((1,), (1,)), ((), ())),
        preferred_element_type=jnp.float32,
    )
    h = jnp.maximum(h + b1_ref[...], 0.0)          # bias + ReLU in f32 (VPU)

    # linear2: (TB, H) x (Out_pad, H) -> (TB, Out_pad); Out_pad is a multiple
    # of 128, so the store below is lane-dense (unmasked vst).
    out = lax.dot_general(
        h, w2_ref[...],
        dimension_numbers=(((1,), (1,)), ((), ())),
        preferred_element_type=jnp.float32,
    )
    o_ref[...] = (out + b2_ref[...]).astype(o_ref.dtype)


def linear_qnet_forward(x, w1, b1, w2, b2, *, batch_tile=512):
    """Forward pass of Linear_QNet.

    Args:
      x:  (B, In)       float32 input batch
      w1: (H, In)       PyTorch-layout weight of linear1
      b1: (H,)
      w2: (Out, H)      PyTorch-layout weight of linear2
      b2: (Out,)
    Returns:
      (B, Out) float32
    """
    x = jnp.asarray(x, jnp.float32)
    w1 = jnp.asarray(w1, jnp.float32)   # (H, In)  -- kept in (out, in) layout
    b1 = jnp.asarray(b1, jnp.float32)
    w2 = jnp.asarray(w2, jnp.float32)   # (Out, H)
    b2 = jnp.asarray(b2, jnp.float32)

    B, In = x.shape
    H = w1.shape[0]
    Out = w2.shape[0]

    # Lane-dense output: pad output features to a multiple of 128 with zero
    # rows in w2 / zeros in b2 (exact math for the real columns).
    Out_pad = _round_up(Out, 128)
    if Out_pad != Out:
        w2p = jnp.zeros((Out_pad, H), jnp.float32).at[:Out].set(w2)
        b2p = jnp.zeros((Out_pad,), jnp.float32).at[:Out].set(b2)
    else:
        w2p, b2p = w2, b2
    b1_2d = b1.reshape(1, H)
    b2_2d = b2p.reshape(1, Out_pad)

    # Batch grid: TB rows per step (multiple of 8, capped for v7x VMEM).
    # Weights/biases use constant index maps -> stay VMEM-resident across the
    # whole grid; x/out tiles are double-buffered by BlockSpec pipelining.
    TB = min(batch_tile, _round_up(B, 8))
    B_pad = _round_up(B, TB)
    if B_pad != B:
        x = jnp.zeros((B_pad, In), jnp.float32).at[:B].set(x)
    grid = (B_pad // TB,)

    flops = 2 * B_pad * (In * H + H * Out_pad)
    bytes_accessed = 4 * (
        B_pad * In + H * In + H + Out_pad * H + Out_pad + B_pad * Out_pad
    )
    cost = pl.CostEstimate(
        flops=flops, transcendentals=0, bytes_accessed=bytes_accessed
    )

    out = pl.pallas_call(
        _qnet_kernel,
        out_shape=jax.ShapeDtypeStruct((B_pad, Out_pad), jnp.float32),
        grid=grid,
        in_specs=[
            pl.BlockSpec((TB, In), lambda i: (i, 0)),        # x: tiled over batch
            pl.BlockSpec((H, In), lambda i: (0, 0)),         # w1: resident
            pl.BlockSpec((1, H), lambda i: (0, 0)),          # b1: resident
            pl.BlockSpec((Out_pad, H), lambda i: (0, 0)),    # w2 (padded): resident
            pl.BlockSpec((1, Out_pad), lambda i: (0, 0)),    # b2 (padded): resident
        ],
        out_specs=pl.BlockSpec((TB, Out_pad), lambda i: (i, 0)),
        compiler_params=pltpu.CompilerParams(
            dimension_semantics=("parallel",),               # v7x: shard across TCs
        ),
        cost_estimate=cost,
    )(x, w1, b1_2d, w2p, b2_2d)

    return out[:B, :Out]


def init_linear_params(key, in_features, out_features):
    """Deterministic init matching torch.nn.Linear default (kaiming-uniform-ish)."""
    kw, kb = jax.random.split(key)
    bound = 1.0 / jnp.sqrt(jnp.float32(in_features))
    w = jax.random.uniform(kw, (out_features, in_features), jnp.float32,
                           minval=-bound, maxval=bound)
    b = jax.random.uniform(kb, (out_features,), jnp.float32,
                           minval=-bound, maxval=bound)
    return w, b


if __name__ == "__main__":
    # Small shapes consistent with the module (input -> hidden -> output).
    batch, input_size, hidden_size, output_size = 8, 16, 32, 4

    key = jax.random.PRNGKey(0)
    kx, k1, k2 = jax.random.split(key, 3)

    x = jax.random.normal(kx, (batch, input_size), jnp.float32)
    w1, b1 = init_linear_params(k1, input_size, hidden_size)
    w2, b2 = init_linear_params(k2, hidden_size, output_size)

    out = linear_qnet_forward(x, w1, b1, w2, b2)
    out = jax.block_until_ready(out)

    # Pure-JAX reference (same math, no Pallas).
    ref = jnp.maximum(x @ w1.T + b1, 0.0) @ w2.T + b2
    assert out.shape == (batch, output_size)
    assert jnp.allclose(out, ref, atol=1e-5, rtol=1e-5)

    # Also exercise a larger, tiled batch to cover the grid path.
    big_b = 1024
    xb = jax.random.normal(kx, (big_b, input_size), jnp.float32)
    out_b = jax.block_until_ready(linear_qnet_forward(xb, w1, b1, w2, b2))
    ref_b = jnp.maximum(xb @ w1.T + b1, 0.0) @ w2.T + b2
    assert out_b.shape == (big_b, output_size)
    assert jnp.allclose(out_b, ref_b, atol=1e-5, rtol=1e-5)

    print("KERNEL_OK")
</pallas_src>

<mosaic_0001>
module attributes {stable_mosaic.version = 11 : i64} {
  func.func @_qnet_kernel(%arg0: i32, %arg1: memref<8x16xf32, #tpu.memory_space<vmem>>, %arg2: memref<32x16xf32, #tpu.memory_space<vmem>>, %arg3: memref<1x32xf32, #tpu.memory_space<vmem>>, %arg4: memref<128x32xf32, #tpu.memory_space<vmem>>, %arg5: memref<1x128xf32, #tpu.memory_space<vmem>>, %arg6: memref<8x128xf32, #tpu.memory_space<vmem>>) attributes {dimension_semantics = [#tpu.dimension_semantics<parallel>], iteration_bounds = array<i64: 1>, scalar_prefetch = 0 : i64, scratch_operands = 0 : i64, tpu.core_type = #tpu.core_type<tc>, window_params = [{transform_indices = @transform_0, window_bounds = array<i64: 8, 16>}, {pipeline_mode = #tpu.pipeline_mode<synchronous>, transform_indices = @transform_1, window_bounds = array<i64: 32, 16>}, {pipeline_mode = #tpu.pipeline_mode<synchronous>, transform_indices = @transform_2, window_bounds = array<i64: 1, 32>}, {pipeline_mode = #tpu.pipeline_mode<synchronous>, transform_indices = @transform_3, window_bounds = array<i64: 128, 32>}, {pipeline_mode = #tpu.pipeline_mode<synchronous>, transform_indices = @transform_4, window_bounds = array<i64: 1, 128>}, {transform_indices = @transform_5, window_bounds = array<i64: 8, 128>}]} {
    %c0 = arith.constant 0 : index
    %c0_0 = arith.constant 0 : index
    %0 = vector.load %arg1[%c0, %c0_0] : memref<8x16xf32, #tpu.memory_space<vmem>>, vector<8x16xf32>
    %c0_1 = arith.constant 0 : index
    %c0_2 = arith.constant 0 : index
    %1 = vector.load %arg2[%c0_1, %c0_2] : memref<32x16xf32, #tpu.memory_space<vmem>>, vector<32x16xf32>
    %cst = arith.constant dense<0.000000e+00> : vector<8x32xf32>
    %2 = tpu.matmul %0, %1, %cst {dimension_numbers = #tpu.dot_dimension_numbers<[1], [1], [0], [0], [0, 0, 1, 0], [], []>} : vector<8x16xf32>, vector<32x16xf32>, vector<8x32xf32> -> vector<8x32xf32>
    %c0_3 = arith.constant 0 : index
    %c0_4 = arith.constant 0 : index
    %3 = vector.load %arg3[%c0_3, %c0_4] : memref<1x32xf32, #tpu.memory_space<vmem>>, vector<1x32xf32>
    %4 = vector.broadcast %3 : vector<1x32xf32> to vector<8x32xf32>
    %5 = arith.addf %2, %4 : vector<8x32xf32>
    %cst_5 = arith.constant 0.000000e+00 : f32
    %6 = vector.broadcast %cst_5 : f32 to vector<8x32xf32>
    %7 = arith.maximumf %5, %6 : vector<8x32xf32>
    %c0_6 = arith.constant 0 : index
    %c0_7 = arith.constant 0 : index
    %8 = vector.load %arg4[%c0_6, %c0_7] : memref<128x32xf32, #tpu.memory_space<vmem>>, vector<128x32xf32>
    %cst_8 = arith.constant dense<0.000000e+00> : vector<8x128xf32>
    %9 = tpu.matmul %7, %8, %cst_8 {dimension_numbers = #tpu.dot_dimension_numbers<[1], [1], [0], [0], [0, 0, 1, 0], [], []>} : vector<8x32xf32>, vector<128x32xf32>, vector<8x128xf32> -> vector<8x128xf32>
    %c0_9 = arith.constant 0 : index
    %c0_10 = arith.constant 0 : index
    %10 = vector.load %arg5[%c0_9, %c0_10] : memref<1x128xf32, #tpu.memory_space<vmem>>, vector<1x128xf32>
    %11 = vector.broadcast %10 : vector<1x128xf32> to vector<8x128xf32>
    %12 = arith.addf %9, %11 : vector<8x128xf32>
    %c0_11 = arith.constant 0 : index
    %c0_12 = arith.constant 0 : index
    %13 = vector.load %arg6[%c0_11, %c0_12] : memref<8x128xf32, #tpu.memory_space<vmem>>, vector<8x128xf32>
    tpu.vector_store %arg6[%c0_11, %c0_12], %12 {strides = array<i32>} : memref<8x128xf32, #tpu.memory_space<vmem>>, vector<8x128xf32>,
    return
  }
  func.func @transform_0(%arg0: i32) -> (i32, i32) {
    %c0_i32 = arith.constant 0 : i32
    %c0_i32_0 = arith.constant 0 : i32
    return %arg0, %c0_i32 : i32, i32
  }
  func.func @transform_1(%arg0: i32) -> (i32, i32) {
    %c0_i32 = arith.constant 0 : i32
    %c0_i32_0 = arith.constant 0 : i32
    %c0_i32_1 = arith.constant 0 : i32
    return %c0_i32, %c0_i32_0 : i32, i32
  }
  func.func @transform_2(%arg0: i32) -> (i32, i32) {
    %c0_i32 = arith.constant 0 : i32
    %c0_i32_0 = arith.constant 0 : i32
    %c0_i32_1 = arith.constant 0 : i32
    return %c0_i32, %c0_i32_0 : i32, i32
  }
  func.func @transform_3(%arg0: i32) -> (i32, i32) {
    %c0_i32 = arith.constant 0 : i32
    %c0_i32_0 = arith.constant 0 : i32
    %c0_i32_1 = arith.constant 0 : i32
    return %c0_i32, %c0_i32_0 : i32, i32
  }
  func.func @transform_4(%arg0: i32) -> (i32, i32) {
    %c0_i32 = arith.constant 0 : i32
    %c0_i32_0 = arith.constant 0 : i32
    %c0_i32_1 = arith.constant 0 : i32
    return %c0_i32, %c0_i32_0 : i32, i32
  }
  func.func @transform_5(%arg0: i32) -> (i32, i32) {
    %c0_i32 = arith.constant 0 : i32
    %c0_i32_0 = arith.constant 0 : i32
    return %arg0, %c0_i32 : i32, i32
  }
}

</mosaic_0001>

<bundles_post_ra>
// kernel: tpu_custom_call.1
= control target key start
LH: loop header
LB: loop body
LE: loop exit
PB: predicated region body
PF: predicated region fallthrough
CT: control target
= control target key end

     0   :  { %vm30_vm0 = vcmask 130048   ;;  %vm87_vm1 = vcmask 261120   ;;  %s352_s0 = inlined_call_operand.vmem [shape: f32[8,16], index: 0, kind: input, shape index: {}]   ;;  %s353_s1 = inlined_call_operand.vmem [shape: f32[32,16], index: 1, kind: input, shape index: {}]   ;;  %s354_s2 = inlined_call_operand.vmem [shape: f32[1,32], index: 2, kind: input, shape index: {}]   ;;  %s355_s3 = inlined_call_operand.vmem [shape: f32[128,32], index: 3, kind: input, shape index: {}]   ;;  %s356_s4 = inlined_call_operand.vmem [shape: f32[1,128], index: 4, kind: input, shape index: {}]   ;;  %s357_s5 = inlined_call_operand.hbm [shape: f32[8,128], index: 5, kind: output, shape index: {}]  }
   0x1   :  { %v25_v0 = vld [vmem:[%s353_s1 + $0x18] sm:$0xff]  ;;  %v24_v2 = vld [vmem:[%s353_s1 + $0x10] sm:$0xff] }
   0x2   :  { %176 = vmatpush.xpose.msk.msra.mxu0 %vm30_vm0, %v25_v0  ;;  %v82_v1 = vld [vmem:[%s355_s3 + $0x78] sm:$0xff]  ;;  %v81_v3 = vld [vmem:[%s355_s3 + $0x70] sm:$0xff] }
   0x3   :  { %181 = vmatpush.xpose.msk.msra.mxu1 %vm87_vm1, %v82_v1 }
   0x6   :  { %177 = vmatpush.xpose.msk.msra.mxu0 %vm30_vm0, %v24_v2 }
   0x7   :  { %10 = vsyncpa [#allocation3], 0  ;;  %v23_v4 = vld [vmem:[%s353_s1 + $0x8] sm:$0xff]  ;;  %182 = vmatpush.xpose.msk.msra.mxu1 %vm87_vm1, %v81_v3  ;;  %v22_v6 = vld [vmem:[%s353_s1] sm:$0xff]  ;;  %s227_s12 = smov [#allocation2]  }
   0x8   :  { %v80_v5 = vld [vmem:[%s355_s3 + $0x68] sm:$0xff]  ;;  %v79_v7 = vld [vmem:[%s355_s3 + $0x60] sm:$0xff]  ;;  %v78_v9 = vld [vmem:[%s355_s3 + $0x58] sm:$0xff]  ;;  %s165_s1 = sshll.u32 %s227_s12, 4  ;;  %s166_s1 = int_to_ptr.vmem [resolvable:$true] %s165_s1 }
   0x9   :  { %v21_v8 = vld [vmem:[%s352_s0] sm:$0xff]  ;;  %v77_v10 = vld [vmem:[%s355_s3 + $0x50] sm:$0xff]  ;;  %v76_v11 = vld [vmem:[%s355_s3 + $0x48] sm:$0xff] }
   0xa   :  { %178 = vmatpush.xpose.msk.msra.mxu0 %vm30_vm0, %v23_v4  ;;  %v75_v12 = vld [vmem:[%s355_s3 + $0x40] sm:$0xff]  ;;  %v74_v13 = vld [vmem:[%s355_s3 + $0x38] sm:$0xff]  ;;  %v73_v14 = vld [vmem:[%s355_s3 + $0x30] sm:$0xff] }
   0xb   :  { %183 = vmatpush.xpose.msk.msra.mxu1 %vm87_vm1, %v80_v5  ;;  %v72_v15 = vld [vmem:[%s355_s3 + $0x28] sm:$0xff]  ;;  %v71_v16 = vld [vmem:[%s355_s3 + $0x20] sm:$0xff]  ;;  %v70_v17 = vld [vmem:[%s355_s3 + $0x18] sm:$0xff] }
   0xc   :  { %v69_v18 = vld [vmem:[%s355_s3 + $0x10] sm:$0xff]  ;;  %v68_v19 = vld [vmem:[%s355_s3 + $0x8] sm:$0xff]  ;;  %v67_v20 = vld [vmem:[%s355_s3] sm:$0xff]  ;;  %s167_s3 = sshll.u32 %s357_s5, 4  ;;  %s168_s3 = int_to_ptr.hbm [resolvable:$true] %s167_s3 }
   0xd   :  { %v199_v21 = vld [vmem:[%s354_s2] ss:$0 sm:$0xff] }
   0xe   :  { %179 = vmatpush.xpose.msk.msra.mxu0 %vm30_vm0, %v22_v6  ;;  %v200_v25 = vld [vmem:[%s356_s4] ss:$0 sm:$0xff] }
   0xf   :  { %184 = vmatpush.xpose.msk.msra.mxu1 %vm87_vm1, %v79_v7 }
  0x11   :  { %180 = vmatmul.msk.f32.vlgmr.msra.gmra.mxu0 %vm30_vm0, %v21_v8 }
  0x13   :  { %185 = vmatpush.xpose.msk.msra.mxu1 %vm87_vm1, %v78_v9 }
  0x17   :  { %186 = vmatpush.xpose.msk.msra.mxu1 %vm87_vm1, %v77_v10 }
  0x1b   :  { %187 = vmatpush.xpose.msk.msra.mxu1 %vm87_vm1, %v76_v11 }
  0x1f   :  { %188 = vmatpush.xpose.msk.msra.mxu1 %vm87_vm1, %v75_v12 }
  0x23   :  { %189 = vmatpush.xpose.msk.msra.mxu1 %vm87_vm1, %v74_v13 }
  0x27   :  { %190 = vmatpush.xpose.msk.msra.mxu1 %vm87_vm1, %v73_v14 }
  0x2b   :  { %191 = vmatpush.xpose.msk.msra.mxu1 %vm87_vm1, %v72_v15 }
  0x2f   :  { %192 = vmatpush.xpose.msk.msra.mxu1 %vm87_vm1, %v71_v16 }
  0x33   :  { %193 = vmatpush.xpose.msk.msra.mxu1 %vm87_vm1, %v70_v17 }
  0x37   :  { %194 = vmatpush.xpose.msk.msra.mxu1 %vm87_vm1, %v69_v18 }
  0x3b   :  { %195 = vmatpush.xpose.msk.msra.mxu1 %vm87_vm1, %v68_v19 }
  0x3f   :  { %196 = vmatpush.xpose.msk.msra.mxu1 %vm87_vm1, %v67_v20 }
  0x8e   :  { %v63_v22 = vpop.f32.mrf.mxu0 }
  0x8f   :  { %v64_v23 = vadd.f32 %v199_v21, %v63_v22 }
  0x91   :  { %v66_v24 = vmax.f32 %v64_v23, 0.0 }
  0x93   :  { %197 = vmatmul.msk.f32.vlgmr.msra.gmra.mxu1 %vm87_vm1, %v66_v24 }
 0x110   :  { %v156_v26 = vpop.f32.mrf.mxu1 }
 0x111   :  { %v157_v27 = vadd.f32 %v200_v25, %v156_v26 }
 0x113   :  { %159 = vst [vmem:[#allocation2] sm:$0xff] %v157_v27 }
 0x114   :  { %170 = dma.vmem_to_hbm [thread:$0]  %s166_s1, 128, %s168_s3, [#allocation3]  }
 0x115   :  { %225 = dma.done.wait [#allocation3], 128  }
 0x116   :  { %226 = vsyncadd [#allocation3], 4294967168 }
 0x117   :  { %175 = vsyncpa [#allocation3], 1 }

</bundles_post_ra>
